<compile_context>
chip_gen: v7x
topology: tpu7x:2x2x1
jax: 0.10.0
libtpu: 0.0.40
codegen_flags: <defaults>
</compile_context>

<pallas_src>
import jax
import jax.numpy as jnp
from jax.experimental import pallas as pl
from jax.experimental.pallas import tpu as pltpu


def _swish_kernel(x_ref, o_ref):
    x = x_ref[...].astype(jnp.float32)
    # swish(x) = x * sigmoid(x) = 0.5 * x * (1 + tanh(0.5 * x))
    # tanh is a single EUP push per vreg; remaining ops are cheap VALU work.
    y = 0.5 * x * (1.0 + jnp.tanh(0.5 * x))
    o_ref[...] = y.astype(o_ref.dtype)


def _cdiv(a: int, b: int) -> int:
    return -(-a // b)


def swish(x: jnp.ndarray, *, block_bytes: int = 2 * 1024 * 1024) -> jnp.ndarray:
    """Elementwise Swish via Pallas. Accepts any shape; lane-dense 1D re-chunking."""
    orig_shape = x.shape
    dtype = x.dtype
    n = int(x.size)
    if n == 0:
        return x

    itemsize = jnp.dtype(dtype).itemsize
    # Minimum sublane tile per dtype packing (f32: 8, bf16: 16, int8/fp8: 32).
    sub_min = {4: 8, 2: 16, 1: 32}.get(itemsize, 8)

    flat = x.reshape(-1)

    # Lane-dense column width: largest of {1024, 512, 256, 128} dividing n
    # (avoids any tail padding); otherwise 1024 (128 for tiny inputs) with a
    # small padded tail.
    C = None
    for cand in (1024, 512, 256, 128):
        if n % cand == 0:
            C = cand
            break
    if C is None:
        C = 1024 if n >= 1024 else 128
    R = _cdiv(n, C)

    # Row tile: whole array in one block if small, else ~block_bytes blocks;
    # prefer a row tile that divides R exactly so no padding copy is needed.
    # A block dim equal to the full array dim is always legal, so the
    # single-block path needs no sublane rounding.
    if R * C * itemsize <= block_bytes:
        tr = R
    else:
        target = max(sub_min, (block_bytes // (C * itemsize) // sub_min) * sub_min)
        tr = None
        for cand in range(target, sub_min - 1, -sub_min):
            if R % cand == 0:
                tr = cand
                break
        if tr is None:
            tr = target

    Rp = _cdiv(R, tr) * tr
    pad = Rp * C - n
    if pad > 0:
        # Small flat tail (< one block); skipped entirely when shapes line up
        # (the common case, including the NCHW conformer shapes).
        flat = jnp.pad(flat, (0, pad))
    x2 = flat.reshape(Rp, C)

    grid = (Rp // tr,)

    out = pl.pallas_call(
        _swish_kernel,
        out_shape=jax.ShapeDtypeStruct((Rp, C), dtype),
        grid_spec=pltpu.PrefetchScalarGridSpec(
            num_scalar_prefetch=0,
            grid=grid,
            in_specs=[pl.BlockSpec((tr, C), lambda i: (i, 0))],
            out_specs=pl.BlockSpec((tr, C), lambda i: (i, 0)),
        ),
        compiler_params=pltpu.CompilerParams(
            dimension_semantics=("parallel",),
        ),
    )(x2)

    out_flat = out.reshape(-1)
    if pad > 0:
        out_flat = out_flat[:n]
    return out_flat.reshape(orig_shape)


if __name__ == "__main__":
    key = jax.random.PRNGKey(0)

    # 1) Small NCHW-like input consistent with Swish usage in the conformer
    #    conv module.  n = 2048 -> lane-dense (2, 1024) slab, no padding.
    x = jax.random.normal(key, (2, 4, 16, 16), dtype=jnp.float32)
    y = swish(x)
    jax.block_until_ready(y)
    ref = x * jax.nn.sigmoid(x)
    assert y.shape == x.shape and y.dtype == x.dtype
    assert jnp.allclose(y, ref, atol=1e-5, rtol=1e-5)

    # 2) Ragged size (exercises the tiny-tail padding path).
    x2 = jax.random.normal(jax.random.PRNGKey(1), (3, 5, 7), dtype=jnp.float32)
    y2 = swish(x2)
    jax.block_until_ready(y2)
    ref2 = x2 * jax.nn.sigmoid(x2)
    assert y2.shape == x2.shape and jnp.allclose(y2, ref2, atol=1e-5, rtol=1e-5)

    # 3) bf16 input: native-dtype I/O, f32 in-register compute.
    xb = jax.random.normal(jax.random.PRNGKey(2), (2, 4, 16, 16), dtype=jnp.bfloat16)
    yb = swish(xb)
    jax.block_until_ready(yb)
    xb_f32 = xb.astype(jnp.float32)
    refb = (xb_f32 * jax.nn.sigmoid(xb_f32)).astype(jnp.bfloat16)
    assert yb.shape == xb.shape and yb.dtype == xb.dtype
    assert jnp.allclose(yb.astype(jnp.float32), refb.astype(jnp.float32),
                        atol=5e-2, rtol=2e-2)

    # 4) Larger multi-block case (exercises the tiled/pipelined path).
    xl = jax.random.normal(jax.random.PRNGKey(3), (8, 64, 64, 64), dtype=jnp.float32)
    yl = swish(xl)
    jax.block_until_ready(yl)
    refl = xl * jax.nn.sigmoid(xl)
    assert yl.shape == xl.shape and jnp.allclose(yl, refl, atol=1e-5, rtol=1e-5)

    print("KERNEL_OK")
</pallas_src>

<mosaic_0001>
module attributes {stable_mosaic.version = 11 : i64} {
  func.func @_swish_kernel(%arg0: i32, %arg1: memref<2x1024xf32, #tpu.memory_space<vmem>>, %arg2: memref<2x1024xf32, #tpu.memory_space<vmem>>) attributes {dimension_semantics = [#tpu.dimension_semantics<parallel>], iteration_bounds = array<i64: 1>, scalar_prefetch = 0 : i64, scratch_operands = 0 : i64, tpu.core_type = #tpu.core_type<tc>, window_params = [{transform_indices = @transform_0, window_bounds = array<i64: 2, 1024>}, {transform_indices = @transform_1, window_bounds = array<i64: 2, 1024>}]} {
    %c0 = arith.constant 0 : index
    %c0_0 = arith.constant 0 : index
    %0 = vector.load %arg1[%c0, %c0_0] : memref<2x1024xf32, #tpu.memory_space<vmem>>, vector<2x1024xf32>
    %cst = arith.constant 5.000000e-01 : f32
    %1 = vector.broadcast %cst : f32 to vector<2x1024xf32>
    %2 = arith.mulf %1, %0 : vector<2x1024xf32>
    %cst_1 = arith.constant 5.000000e-01 : f32
    %3 = vector.broadcast %cst_1 : f32 to vector<2x1024xf32>
    %4 = arith.mulf %3, %0 : vector<2x1024xf32>
    %5 = math.tanh %4 : vector<2x1024xf32>
    %cst_2 = arith.constant 1.000000e+00 : f32
    %6 = vector.broadcast %cst_2 : f32 to vector<2x1024xf32>
    %7 = arith.addf %6, %5 : vector<2x1024xf32>
    %8 = arith.mulf %2, %7 : vector<2x1024xf32>
    %c0_3 = arith.constant 0 : index
    %c0_4 = arith.constant 0 : index
    %9 = vector.load %arg2[%c0_3, %c0_4] : memref<2x1024xf32, #tpu.memory_space<vmem>>, vector<2x1024xf32>
    tpu.vector_store %arg2[%c0_3, %c0_4], %8 {strides = array<i32>} : memref<2x1024xf32, #tpu.memory_space<vmem>>, vector<2x1024xf32>,
    return
  }
  func.func @transform_0(%arg0: i32) -> (i32, i32) {
    %c0_i32 = arith.constant 0 : i32
    %c0_i32_0 = arith.constant 0 : i32
    return %arg0, %c0_i32 : i32, i32
  }
  func.func @transform_1(%arg0: i32) -> (i32, i32) {
    %c0_i32 = arith.constant 0 : i32
    %c0_i32_0 = arith.constant 0 : i32
    return %arg0, %c0_i32 : i32, i32
  }
}

</mosaic_0001>

<bundles_post_ra>
// kernel: tpu_custom_call.1
= control target key start
LH: loop header
LB: loop body
LE: loop exit
PB: predicated region body
PF: predicated region fallthrough
CT: control target
= control target key end

     0   :  { %6 = vsyncpa [#allocation3], 0  ;;  %s138_s0 = inlined_call_operand.hbm [shape: f32[2,1024], index: 0, kind: input, shape index: {}]   ;;  %s139_s1 = inlined_call_operand.hbm [shape: f32[2,1024], index: 1, kind: output, shape index: {}]  }
   0x1   :  { %7 = vsyncpa [#allocation4], 0  ;;  %s102_s6 = smov [#allocation2]   ;;  %s54_s10 = scalar_lea.hbm %s138_s0, 256 }
   0x2   :  { %s14_s7 = sshll.u32 %s102_s6, 4  ;;  %p55_p0 = scmp.ne.s32.totalorder %s138_s0, %s54_s10  ;;  %s15_s7 = int_to_ptr.vmem [resolvable:$true] %s14_s7 }
   0x3   :  { %p58_p1 = scmp.lt.u32.totalorder %s54_s10, %s138_s0 }
   0x5   :  { %p60_p2 = pnand %p58_p1, %p55_p0 }
   0x7   :  { %63 = shalt.err (!%p60_p2)
}
   0x8   :  { %s64_s15 = scalar_lea.vmem %s15_s7, 256  ;;  %p69_p4 = scmp.lt.s32.totalorder %s15_s7, %s15_s7 }
   0x9   :  { %p65_p3 = scmp.ne.s32.totalorder %s15_s7, %s64_s15  ;;  %p70_p5 = scmp.lt.s32.totalorder %s64_s15, %s64_s15 }
   0xb   :  { %p71_p6 = por %p70_p5, %p69_p4 }
   0xd   :  { %p72_p7 = pnand %p71_p6, %p65_p3 }
   0xf   :  { %75 = shalt.err (!%p72_p7)
}
  0x10   :  { %17 = dma.hbm_to_vmem [thread:$0]  %s138_s0, 256, %s15_s7, [#allocation3]  }
  0x11   :  { %98 = dma.done.wait [#allocation3], 256  }
  0x12   :  { %99 = vsyncadd [#allocation3], 4294967040  ;;  %v21_v0 = vld [vmem:[#allocation2] sm:$0xff]  ;;  %v22_v1 = vld [vmem:[#allocation2 + $0x8] sm:$0xff]  ;;  %s103_s18 = smov [#allocation5]  }
  0x13   :  { %v23_v2 = vmul.f32 0.5, %v21_v0  ;;  %v24_v3 = vmul.f32 0.5, %v22_v1  ;;  %s39_s19 = sshll.u32 %s103_s18, 4  ;;  %s40_s19 = int_to_ptr.vmem [resolvable:$true] %s39_s19 }
  0x14   :  { %s76_s0 = scalar_lea.vmem %s40_s19, 256  ;;  %p81_p9 = scmp.lt.s32.totalorder %s40_s19, %s40_s19 }
  0x15   :  { %50 = vtanh.f32 %v23_v2  ;;  %p77_p8 = scmp.ne.s32.totalorder %s40_s19, %s76_s0  ;;  %p82_p10 = scmp.lt.s32.totalorder %s76_s0, %s76_s0 }
  0x16   :  { %52 = vtanh.f32 %v24_v3 }
  0x17   :  { %p83_p11 = por %p82_p10, %p81_p9 }
  0x19   :  { %p84_p12 = pnand %p83_p11, %p77_p8 }
  0x1f   :  { %v51_v4 = vpop.eup %50 }
  0x20   :  { %v53_v5 = vpop.eup %52  ;;  %v27_v6 = vadd.f32 1.0, %v51_v4 }
  0x21   :  { %v28_v7 = vadd.f32 1.0, %v53_v5 }
  0x22   :  { %v29_v8 = vmul.f32 %v27_v6, %v23_v2 }
  0x23   :  { %v30_v9 = vmul.f32 %v28_v7, %v24_v3 }
  0x24   :  { %31 = vst [vmem:[#allocation5] sm:$0xff] %v29_v8 }
  0x25   :  { %32 = vst [vmem:[#allocation5 + $0x8] sm:$0xff] %v30_v9 }
  0x26   :  { %87 = shalt.err (!%p84_p12)
}
  0x27   :  { %s88_s22 = scalar_lea.hbm %s139_s1, 256 }
  0x28   :  { %p89_p13 = scmp.ne.s32.totalorder %s139_s1, %s88_s22  ;;  %p92_p0 = scmp.lt.u32.totalorder %s88_s22, %s139_s1 }
  0x2a   :  { %p94_p1 = pnand %p92_p0, %p89_p13 }
  0x2c   :  { %97 = shalt.err (!%p94_p1)
}
  0x2d   :  { %42 = dma.vmem_to_hbm [thread:$0]  %s40_s19, 256, %s139_s1, [#allocation4]  }
  0x2e   :  { %100 = dma.done.wait [#allocation4], 256  }
  0x2f   :  { %101 = vsyncadd [#allocation4], 4294967040 }
  0x30   :  { %46 = vsyncpa [#allocation3], 1 }
  0x31   :  { %47 = vsyncpa [#allocation4], 1 }

</bundles_post_ra>
